<compile_context>
chip_gen: v7x
topology: tpu7x:2x2x1
jax: 0.10.0
libtpu: 0.0.40
codegen_flags: <defaults>
</compile_context>

<pallas_src>
import jax
import jax.numpy as jnp
from jax.experimental import pallas as pl
from jax.experimental.pallas import tpu as pltpu


def critic_kernel(xT_ref, m_ref, c_ref, out_ref):
    """One program computes the value for one batch tile (lanes = batch).

    xT_ref : (A, TB) float32  atom truth values in [0, 1], batch on lanes
    m_ref  : (R, A)  float32  sigmoid(NLAndBiMixed weights), resident
    c_ref  : (R, 1)  float32  combiner weights (Linear(num_rules, 1).weight.T)
    out_ref: (1, TB) float32  critic value per batch element (lane-dense)
    """
    A, TB = xT_ref.shape
    R = m_ref.shape[0]
    m = m_ref[...]                                       # (R, A)

    # NLAndBiMixed soft-AND: multiplicative accumulation over atoms (VALU only).
    acc = jnp.ones((R, TB), dtype=jnp.float32)           # (R, TB)
    for a in range(A):                                   # static unroll, A small
        x_row = xT_ref[a, :][None, :]                    # (1, TB), batch on lanes
        acc = acc * (1.0 - m[:, a:a + 1] * (1.0 - x_row))

    # Combiner: Linear(num_rules, 1, bias=False) -> small sublane reduce over R.
    out_ref[...] = jnp.sum(c_ref[...] * acc, axis=0, keepdims=True)


def critic_forward(x, w, c, *, max_tb=512):
    """x: (B, A) valuations, w: (R, A) AND weights, c: (1, R) combiner -> (B, 1)."""
    B, A = x.shape
    R = w.shape[0]

    # Hoisted parameter transform: sigmoid once per forward, not per grid step.
    m = jax.nn.sigmoid(w.astype(jnp.float32))            # (R, A)
    cT = c.astype(jnp.float32).reshape(1, R).T           # (R, 1)

    # Lane-dense batch tile (multiple of 128), capped; pad batch to a tile multiple.
    bp128 = pl.cdiv(B, 128) * 128
    TB = min(max_tb, bp128)
    Bp = pl.cdiv(B, TB) * TB

    # Layout plumbing in the wrapper: batch on the lane (last) axis, zero-padded.
    xT = jnp.zeros((A, Bp), jnp.float32).at[:, :B].set(x.astype(jnp.float32).T)

    out = pl.pallas_call(
        critic_kernel,
        out_shape=jax.ShapeDtypeStruct((1, Bp), jnp.float32),
        grid=(Bp // TB,),
        in_specs=[
            pl.BlockSpec((A, TB), lambda i: (0, i)),     # batch tile, B on lanes
            pl.BlockSpec((R, A), lambda i: (0, 0)),      # rule weights, resident
            pl.BlockSpec((R, 1), lambda i: (0, 0)),      # combiner, resident
        ],
        out_specs=pl.BlockSpec((1, TB), lambda i: (0, i)),
        compiler_params=pltpu.CompilerParams(
            dimension_semantics=("parallel",)),          # megacore sharding on v7x
    )(xT, m, cT)

    return out[0, :B].reshape(B, 1)


def critic_reference(x, w, c):
    """Pure-JAX reference for correctness checking."""
    m = jax.nn.sigmoid(x.dtype.type(1) * w)
    term = 1.0 - m[None, :, :] * (1.0 - x[:, None, :])   # (B, R, A)
    y = jnp.prod(term, axis=-1)                          # (B, R)
    return y @ c.T                                       # (B, 1)


if __name__ == "__main__":
    # TODO(synk): valuation_to_structure (Valuation -> Structure symbolic
    # conversion) and the `assume_false` Contradiction weight override are
    # Python-side symbolic glue / parameter initialization with no tensor
    # equivalent; the kernel starts from the atom-valuation tensor and the
    # raw NLAndBiMixed / combiner parameters.
    key = jax.random.PRNGKey(0)
    kx, kw, kc, kx2 = jax.random.split(key, 4)

    B, A, R = 8, 32, 8  # batch, n_atoms (non-domain state atoms), num_rules

    x = jax.random.uniform(kx, (B, A), dtype=jnp.float32)           # valuations in [0, 1]
    w = 0.5 * jax.random.normal(kw, (R, A), dtype=jnp.float32)      # and_initializer
    c = jax.random.uniform(kc, (1, R), minval=-0.5, maxval=0.5,
                           dtype=jnp.float32)                       # combiner init U(-0.5, 0.5)

    vals = critic_forward(x, w, c)
    jax.block_until_ready(vals)
    ref = critic_reference(x, w, c)
    assert vals.shape == (B, 1)
    assert jnp.allclose(vals, ref, atol=1e-5, rtol=1e-5)

    # Second check: batch that is not a multiple of 128 -> exercises batch
    # tiling (grid of 2) and the zero-padding / slice-back path.
    B2 = 600
    x2 = jax.random.uniform(kx2, (B2, A), dtype=jnp.float32)
    vals2 = critic_forward(x2, w, c)
    jax.block_until_ready(vals2)
    ref2 = critic_reference(x2, w, c)
    assert vals2.shape == (B2, 1)
    assert jnp.allclose(vals2, ref2, atol=1e-5, rtol=1e-5)

    print("KERNEL_OK")
</pallas_src>

<mosaic_0001>
module attributes {stable_mosaic.version = 11 : i64} {
  func.func @critic_kernel(%arg0: i32, %arg1: memref<32x128xf32, #tpu.memory_space<vmem>>, %arg2: memref<8x32xf32, #tpu.memory_space<vmem>>, %arg3: memref<8x1xf32, #tpu.memory_space<vmem>>, %arg4: memref<1x128xf32, #tpu.memory_space<vmem>>) attributes {dimension_semantics = [#tpu.dimension_semantics<parallel>], iteration_bounds = array<i64: 1>, scalar_prefetch = 0 : i64, scratch_operands = 0 : i64, tpu.core_type = #tpu.core_type<tc>, window_params = [{transform_indices = @transform_0, window_bounds = array<i64: 32, 128>}, {pipeline_mode = #tpu.pipeline_mode<synchronous>, transform_indices = @transform_1, window_bounds = array<i64: 8, 32>}, {pipeline_mode = #tpu.pipeline_mode<synchronous>, transform_indices = @transform_2, window_bounds = array<i64: 8, 1>}, {transform_indices = @transform_3, window_bounds = array<i64: 1, 128>}]} {
    %c0 = arith.constant 0 : index
    %c0_0 = arith.constant 0 : index
    %0 = vector.load %arg2[%c0, %c0_0] : memref<8x32xf32, #tpu.memory_space<vmem>>, vector<8x32xf32>
    %cst = arith.constant 1.000000e+00 : f32
    %1 = vector.broadcast %cst : f32 to vector<8x128xf32>
    %c0_1 = arith.constant 0 : index
    %c0_2 = arith.constant 0 : index
    %2 = vector.load %arg1[%c0_1, %c0_2] : memref<32x128xf32, #tpu.memory_space<vmem>>, vector<1x128xf32>
    %3 = vector.shape_cast %2 : vector<1x128xf32> to vector<128xf32>
    %4 = vector.shape_cast %3 : vector<128xf32> to vector<1x128xf32>
    %5 = vector.extract_strided_slice %0 {offsets = [0, 0], sizes = [8, 1], strides = [1, 1]} : vector<8x32xf32> to vector<8x1xf32>
    %cst_3 = arith.constant 1.000000e+00 : f32
    %6 = vector.broadcast %cst_3 : f32 to vector<1x128xf32>
    %7 = arith.subf %6, %4 : vector<1x128xf32>
    %8 = vector.broadcast %5 : vector<8x1xf32> to vector<8x128xf32>
    %9 = vector.broadcast %7 : vector<1x128xf32> to vector<8x128xf32>
    %10 = arith.mulf %8, %9 : vector<8x128xf32>
    %cst_4 = arith.constant 1.000000e+00 : f32
    %11 = vector.broadcast %cst_4 : f32 to vector<8x128xf32>
    %12 = arith.subf %11, %10 : vector<8x128xf32>
    %13 = arith.mulf %1, %12 : vector<8x128xf32>
    %c1 = arith.constant 1 : index
    %c0_5 = arith.constant 0 : index
    %14 = vector.load %arg1[%c1, %c0_5] : memref<32x128xf32, #tpu.memory_space<vmem>>, vector<1x128xf32>
    %15 = vector.shape_cast %14 : vector<1x128xf32> to vector<128xf32>
    %16 = vector.shape_cast %15 : vector<128xf32> to vector<1x128xf32>
    %17 = vector.extract_strided_slice %0 {offsets = [0, 1], sizes = [8, 1], strides = [1, 1]} : vector<8x32xf32> to vector<8x1xf32>
    %cst_6 = arith.constant 1.000000e+00 : f32
    %18 = vector.broadcast %cst_6 : f32 to vector<1x128xf32>
    %19 = arith.subf %18, %16 : vector<1x128xf32>
    %20 = vector.broadcast %17 : vector<8x1xf32> to vector<8x128xf32>
    %21 = vector.broadcast %19 : vector<1x128xf32> to vector<8x128xf32>
    %22 = arith.mulf %20, %21 : vector<8x128xf32>
    %cst_7 = arith.constant 1.000000e+00 : f32
    %23 = vector.broadcast %cst_7 : f32 to vector<8x128xf32>
    %24 = arith.subf %23, %22 : vector<8x128xf32>
    %25 = arith.mulf %13, %24 : vector<8x128xf32>
    %c2 = arith.constant 2 : index
    %c0_8 = arith.constant 0 : index
    %26 = vector.load %arg1[%c2, %c0_8] : memref<32x128xf32, #tpu.memory_space<vmem>>, vector<1x128xf32>
    %27 = vector.shape_cast %26 : vector<1x128xf32> to vector<128xf32>
    %28 = vector.shape_cast %27 : vector<128xf32> to vector<1x128xf32>
    %29 = vector.extract_strided_slice %0 {offsets = [0, 2], sizes = [8, 1], strides = [1, 1]} : vector<8x32xf32> to vector<8x1xf32>
    %cst_9 = arith.constant 1.000000e+00 : f32
    %30 = vector.broadcast %cst_9 : f32 to vector<1x128xf32>
    %31 = arith.subf %30, %28 : vector<1x128xf32>
    %32 = vector.broadcast %29 : vector<8x1xf32> to vector<8x128xf32>
    %33 = vector.broadcast %31 : vector<1x128xf32> to vector<8x128xf32>
    %34 = arith.mulf %32, %33 : vector<8x128xf32>
    %cst_10 = arith.constant 1.000000e+00 : f32
    %35 = vector.broadcast %cst_10 : f32 to vector<8x128xf32>
    %36 = arith.subf %35, %34 : vector<8x128xf32>
    %37 = arith.mulf %25, %36 : vector<8x128xf32>
    %c3 = arith.constant 3 : index
    %c0_11 = arith.constant 0 : index
    %38 = vector.load %arg1[%c3, %c0_11] : memref<32x128xf32, #tpu.memory_space<vmem>>, vector<1x128xf32>
    %39 = vector.shape_cast %38 : vector<1x128xf32> to vector<128xf32>
    %40 = vector.shape_cast %39 : vector<128xf32> to vector<1x128xf32>
    %41 = vector.extract_strided_slice %0 {offsets = [0, 3], sizes = [8, 1], strides = [1, 1]} : vector<8x32xf32> to vector<8x1xf32>
    %cst_12 = arith.constant 1.000000e+00 : f32
    %42 = vector.broadcast %cst_12 : f32 to vector<1x128xf32>
    %43 = arith.subf %42, %40 : vector<1x128xf32>
    %44 = vector.broadcast %41 : vector<8x1xf32> to vector<8x128xf32>
    %45 = vector.broadcast %43 : vector<1x128xf32> to vector<8x128xf32>
    %46 = arith.mulf %44, %45 : vector<8x128xf32>
    %cst_13 = arith.constant 1.000000e+00 : f32
    %47 = vector.broadcast %cst_13 : f32 to vector<8x128xf32>
    %48 = arith.subf %47, %46 : vector<8x128xf32>
    %49 = arith.mulf %37, %48 : vector<8x128xf32>
    %c4 = arith.constant 4 : index
    %c0_14 = arith.constant 0 : index
    %50 = vector.load %arg1[%c4, %c0_14] : memref<32x128xf32, #tpu.memory_space<vmem>>, vector<1x128xf32>
    %51 = vector.shape_cast %50 : vector<1x128xf32> to vector<128xf32>
    %52 = vector.shape_cast %51 : vector<128xf32> to vector<1x128xf32>
    %53 = vector.extract_strided_slice %0 {offsets = [0, 4], sizes = [8, 1], strides = [1, 1]} : vector<8x32xf32> to vector<8x1xf32>
    %cst_15 = arith.constant 1.000000e+00 : f32
    %54 = vector.broadcast %cst_15 : f32 to vector<1x128xf32>
    %55 = arith.subf %54, %52 : vector<1x128xf32>
    %56 = vector.broadcast %53 : vector<8x1xf32> to vector<8x128xf32>
    %57 = vector.broadcast %55 : vector<1x128xf32> to vector<8x128xf32>
    %58 = arith.mulf %56, %57 : vector<8x128xf32>
    %cst_16 = arith.constant 1.000000e+00 : f32
    %59 = vector.broadcast %cst_16 : f32 to vector<8x128xf32>
    %60 = arith.subf %59, %58 : vector<8x128xf32>
    %61 = arith.mulf %49, %60 : vector<8x128xf32>
    %c5 = arith.constant 5 : index
    %c0_17 = arith.constant 0 : index
    %62 = vector.load %arg1[%c5, %c0_17] : memref<32x128xf32, #tpu.memory_space<vmem>>, vector<1x128xf32>
    %63 = vector.shape_cast %62 : vector<1x128xf32> to vector<128xf32>
    %64 = vector.shape_cast %63 : vector<128xf32> to vector<1x128xf32>
    %65 = vector.extract_strided_slice %0 {offsets = [0, 5], sizes = [8, 1], strides = [1, 1]} : vector<8x32xf32> to vector<8x1xf32>
    %cst_18 = arith.constant 1.000000e+00 : f32
    %66 = vector.broadcast %cst_18 : f32 to vector<1x128xf32>
    %67 = arith.subf %66, %64 : vector<1x128xf32>
    %68 = vector.broadcast %65 : vector<8x1xf32> to vector<8x128xf32>
    %69 = vector.broadcast %67 : vector<1x128xf32> to vector<8x128xf32>
    %70 = arith.mulf %68, %69 : vector<8x128xf32>
    %cst_19 = arith.constant 1.000000e+00 : f32
    %71 = vector.broadcast %cst_19 : f32 to vector<8x128xf32>
    %72 = arith.subf %71, %70 : vector<8x128xf32>
    %73 = arith.mulf %61, %72 : vector<8x128xf32>
    %c6 = arith.constant 6 : index
    %c0_20 = arith.constant 0 : index
    %74 = vector.load %arg1[%c6, %c0_20] : memref<32x128xf32, #tpu.memory_space<vmem>>, vector<1x128xf32>
    %75 = vector.shape_cast %74 : vector<1x128xf32> to vector<128xf32>
    %76 = vector.shape_cast %75 : vector<128xf32> to vector<1x128xf32>
    %77 = vector.extract_strided_slice %0 {offsets = [0, 6], sizes = [8, 1], strides = [1, 1]} : vector<8x32xf32> to vector<8x1xf32>
    %cst_21 = arith.constant 1.000000e+00 : f32
    %78 = vector.broadcast %cst_21 : f32 to vector<1x128xf32>
    %79 = arith.subf %78, %76 : vector<1x128xf32>
    %80 = vector.broadcast %77 : vector<8x1xf32> to vector<8x128xf32>
    %81 = vector.broadcast %79 : vector<1x128xf32> to vector<8x128xf32>
    %82 = arith.mulf %80, %81 : vector<8x128xf32>
    %cst_22 = arith.constant 1.000000e+00 : f32
    %83 = vector.broadcast %cst_22 : f32 to vector<8x128xf32>
    %84 = arith.subf %83, %82 : vector<8x128xf32>
    %85 = arith.mulf %73, %84 : vector<8x128xf32>
    %c7 = arith.constant 7 : index
    %c0_23 = arith.constant 0 : index
    %86 = vector.load %arg1[%c7, %c0_23] : memref<32x128xf32, #tpu.memory_space<vmem>>, vector<1x128xf32>
    %87 = vector.shape_cast %86 : vector<1x128xf32> to vector<128xf32>
    %88 = vector.shape_cast %87 : vector<128xf32> to vector<1x128xf32>
    %89 = vector.extract_strided_slice %0 {offsets = [0, 7], sizes = [8, 1], strides = [1, 1]} : vector<8x32xf32> to vector<8x1xf32>
    %cst_24 = arith.constant 1.000000e+00 : f32
    %90 = vector.broadcast %cst_24 : f32 to vector<1x128xf32>
    %91 = arith.subf %90, %88 : vector<1x128xf32>
    %92 = vector.broadcast %89 : vector<8x1xf32> to vector<8x128xf32>
    %93 = vector.broadcast %91 : vector<1x128xf32> to vector<8x128xf32>
    %94 = arith.mulf %92, %93 : vector<8x128xf32>
    %cst_25 = arith.constant 1.000000e+00 : f32
    %95 = vector.broadcast %cst_25 : f32 to vector<8x128xf32>
    %96 = arith.subf %95, %94 : vector<8x128xf32>
    %97 = arith.mulf %85, %96 : vector<8x128xf32>
    %c8 = arith.constant 8 : index
    %c0_26 = arith.constant 0 : index
    %98 = vector.load %arg1[%c8, %c0_26] : memref<32x128xf32, #tpu.memory_space<vmem>>, vector<1x128xf32>
    %99 = vector.shape_cast %98 : vector<1x128xf32> to vector<128xf32>
    %100 = vector.shape_cast %99 : vector<128xf32> to vector<1x128xf32>
    %101 = vector.extract_strided_slice %0 {offsets = [0, 8], sizes = [8, 1], strides = [1, 1]} : vector<8x32xf32> to vector<8x1xf32>
    %cst_27 = arith.constant 1.000000e+00 : f32
    %102 = vector.broadcast %cst_27 : f32 to vector<1x128xf32>
    %103 = arith.subf %102, %100 : vector<1x128xf32>
    %104 = vector.broadcast %101 : vector<8x1xf32> to vector<8x128xf32>
    %105 = vector.broadcast %103 : vector<1x128xf32> to vector<8x128xf32>
    %106 = arith.mulf %104, %105 : vector<8x128xf32>
    %cst_28 = arith.constant 1.000000e+00 : f32
    %107 = vector.broadcast %cst_28 : f32 to vector<8x128xf32>
    %108 = arith.subf %107, %106 : vector<8x128xf32>
    %109 = arith.mulf %97, %108 : vector<8x128xf32>
    %c9 = arith.constant 9 : index
    %c0_29 = arith.constant 0 : index
    %110 = vector.load %arg1[%c9, %c0_29] : memref<32x128xf32, #tpu.memory_space<vmem>>, vector<1x128xf32>
    %111 = vector.shape_cast %110 : vector<1x128xf32> to vector<128xf32>
    %112 = vector.shape_cast %111 : vector<128xf32> to vector<1x128xf32>
    %113 = vector.extract_strided_slice %0 {offsets = [0, 9], sizes = [8, 1], strides = [1, 1]} : vector<8x32xf32> to vector<8x1xf32>
    %cst_30 = arith.constant 1.000000e+00 : f32
    %114 = vector.broadcast %cst_30 : f32 to vector<1x128xf32>
    %115 = arith.subf %114, %112 : vector<1x128xf32>
    %116 = vector.broadcast %113 : vector<8x1xf32> to vector<8x128xf32>
    %117 = vector.broadcast %115 : vector<1x128xf32> to vector<8x128xf32>
    %118 = arith.mulf %116, %117 : vector<8x128xf32>
    %cst_31 = arith.constant 1.000000e+00 : f32
    %119 = vector.broadcast %cst_31 : f32 to vector<8x128xf32>
    %120 = arith.subf %119, %118 : vector<8x128xf32>
    %121 = arith.mulf %109, %120 : vector<8x128xf32>
    %c10 = arith.constant 10 : index
    %c0_32 = arith.constant 0 : index
    %122 = vector.load %arg1[%c10, %c0_32] : memref<32x128xf32, #tpu.memory_space<vmem>>, vector<1x128xf32>
    %123 = vector.shape_cast %122 : vector<1x128xf32> to vector<128xf32>
    %124 = vector.shape_cast %123 : vector<128xf32> to vector<1x128xf32>
    %125 = vector.extract_strided_slice %0 {offsets = [0, 10], sizes = [8, 1], strides = [1, 1]} : vector<8x32xf32> to vector<8x1xf32>
    %cst_33 = arith.constant 1.000000e+00 : f32
    %126 = vector.broadcast %cst_33 : f32 to vector<1x128xf32>
    %127 = arith.subf %126, %124 : vector<1x128xf32>
    %128 = vector.broadcast %125 : vector<8x1xf32> to vector<8x128xf32>
    %129 = vector.broadcast %127 : vector<1x128xf32> to vector<8x128xf32>
    %130 = arith.mulf %128, %129 : vector<8x128xf32>
    %cst_34 = arith.constant 1.000000e+00 : f32
    %131 = vector.broadcast %cst_34 : f32 to vector<8x128xf32>
    %132 = arith.subf %131, %130 : vector<8x128xf32>
    %133 = arith.mulf %121, %132 : vector<8x128xf32>
    %c11 = arith.constant 11 : index
    %c0_35 = arith.constant 0 : index
    %134 = vector.load %arg1[%c11, %c0_35] : memref<32x128xf32, #tpu.memory_space<vmem>>, vector<1x128xf32>
    %135 = vector.shape_cast %134 : vector<1x128xf32> to vector<128xf32>
    %136 = vector.shape_cast %135 : vector<128xf32> to vector<1x128xf32>
    %137 = vector.extract_strided_slice %0 {offsets = [0, 11], sizes = [8, 1], strides = [1, 1]} : vector<8x32xf32> to vector<8x1xf32>
    %cst_36 = arith.constant 1.000000e+00 : f32
    %138 = vector.broadcast %cst_36 : f32 to vector<1x128xf32>
    %139 = arith.subf %138, %136 : vector<1x128xf32>
    %140 = vector.broadcast %137 : vector<8x1xf32> to vector<8x128xf32>
    %141 = vector.broadcast %139 : vector<1x128xf32> to vector<8x128xf32>
    %142 = arith.mulf %140, %141 : vector<8x128xf32>
    %cst_37 = arith.constant 1.000000e+00 : f32
    %143 = vector.broadcast %cst_37 : f32 to vector<8x128xf32>
    %144 = arith.subf %143, %142 : vector<8x128xf32>
    %145 = arith.mulf %133, %144 : vector<8x128xf32>
    %c12 = arith.constant 12 : index
    %c0_38 = arith.constant 0 : index
    %146 = vector.load %arg1[%c12, %c0_38] : memref<32x128xf32, #tpu.memory_space<vmem>>, vector<1x128xf32>
    %147 = vector.shape_cast %146 : vector<1x128xf32> to vector<128xf32>
    %148 = vector.shape_cast %147 : vector<128xf32> to vector<1x128xf32>
    %149 = vector.extract_strided_slice %0 {offsets = [0, 12], sizes = [8, 1], strides = [1, 1]} : vector<8x32xf32> to vector<8x1xf32>
    %cst_39 = arith.constant 1.000000e+00 : f32
    %150 = vector.broadcast %cst_39 : f32 to vector<1x128xf32>
    %151 = arith.subf %150, %148 : vector<1x128xf32>
    %152 = vector.broadcast %149 : vector<8x1xf32> to vector<8x128xf32>
    %153 = vector.broadcast %151 : vector<1x128xf32> to vector<8x128xf32>
    %154 = arith.mulf %152, %153 : vector<8x128xf32>
    %cst_40 = arith.constant 1.000000e+00 : f32
    %155 = vector.broadcast %cst_40 : f32 to vector<8x128xf32>
    %156 = arith.subf %155, %154 : vector<8x128xf32>
    %157 = arith.mulf %145, %156 : vector<8x128xf32>
    %c13 = arith.constant 13 : index
    %c0_41 = arith.constant 0 : index
    %158 = vector.load %arg1[%c13, %c0_41] : memref<32x128xf32, #tpu.memory_space<vmem>>, vector<1x128xf32>
    %159 = vector.shape_cast %158 : vector<1x128xf32> to vector<128xf32>
    %160 = vector.shape_cast %159 : vector<128xf32> to vector<1x128xf32>
    %161 = vector.extract_strided_slice %0 {offsets = [0, 13], sizes = [8, 1], strides = [1, 1]} : vector<8x32xf32> to vector<8x1xf32>
    %cst_42 = arith.constant 1.000000e+00 : f32
    %162 = vector.broadcast %cst_42 : f32 to vector<1x128xf32>
    %163 = arith.subf %162, %160 : vector<1x128xf32>
    %164 = vector.broadcast %161 : vector<8x1xf32> to vector<8x128xf32>
    %165 = vector.broadcast %163 : vector<1x128xf32> to vector<8x128xf32>
    %166 = arith.mulf %164, %165 : vector<8x128xf32>
    %cst_43 = arith.constant 1.000000e+00 : f32
    %167 = vector.broadcast %cst_43 : f32 to vector<8x128xf32>
    %168 = arith.subf %167, %166 : vector<8x128xf32>
    %169 = arith.mulf %157, %168 : vector<8x128xf32>
    %c14 = arith.constant 14 : index
    %c0_44 = arith.constant 0 : index
    %170 = vector.load %arg1[%c14, %c0_44] : memref<32x128xf32, #tpu.memory_space<vmem>>, vector<1x128xf32>
    %171 = vector.shape_cast %170 : vector<1x128xf32> to vector<128xf32>
    %172 = vector.shape_cast %171 : vector<128xf32> to vector<1x128xf32>
    %173 = vector.extract_strided_slice %0 {offsets = [0, 14], sizes = [8, 1], strides = [1, 1]} : vector<8x32xf32> to vector<8x1xf32>
    %cst_45 = arith.constant 1.000000e+00 : f32
    %174 = vector.broadcast %cst_45 : f32 to vector<1x128xf32>
    %175 = arith.subf %174, %172 : vector<1x128xf32>
    %176 = vector.broadcast %173 : vector<8x1xf32> to vector<8x128xf32>
    %177 = vector.broadcast %175 : vector<1x128xf32> to vector<8x128xf32>
    %178 = arith.mulf %176, %177 : vector<8x128xf32>
    %cst_46 = arith.constant 1.000000e+00 : f32
    %179 = vector.broadcast %cst_46 : f32 to vector<8x128xf32>
    %180 = arith.subf %179, %178 : vector<8x128xf32>
    %181 = arith.mulf %169, %180 : vector<8x128xf32>
    %c15 = arith.constant 15 : index
    %c0_47 = arith.constant 0 : index
    %182 = vector.load %arg1[%c15, %c0_47] : memref<32x128xf32, #tpu.memory_space<vmem>>, vector<1x128xf32>
    %183 = vector.shape_cast %182 : vector<1x128xf32> to vector<128xf32>
    %184 = vector.shape_cast %183 : vector<128xf32> to vector<1x128xf32>
    %185 = vector.extract_strided_slice %0 {offsets = [0, 15], sizes = [8, 1], strides = [1, 1]} : vector<8x32xf32> to vector<8x1xf32>
    %cst_48 = arith.constant 1.000000e+00 : f32
    %186 = vector.broadcast %cst_48 : f32 to vector<1x128xf32>
    %187 = arith.subf %186, %184 : vector<1x128xf32>
    %188 = vector.broadcast %185 : vector<8x1xf32> to vector<8x128xf32>
    %189 = vector.broadcast %187 : vector<1x128xf32> to vector<8x128xf32>
    %190 = arith.mulf %188, %189 : vector<8x128xf32>
    %cst_49 = arith.constant 1.000000e+00 : f32
    %191 = vector.broadcast %cst_49 : f32 to vector<8x128xf32>
    %192 = arith.subf %191, %190 : vector<8x128xf32>
    %193 = arith.mulf %181, %192 : vector<8x128xf32>
    %c16 = arith.constant 16 : index
    %c0_50 = arith.constant 0 : index
    %194 = vector.load %arg1[%c16, %c0_50] : memref<32x128xf32, #tpu.memory_space<vmem>>, vector<1x128xf32>
    %195 = vector.shape_cast %194 : vector<1x128xf32> to vector<128xf32>
    %196 = vector.shape_cast %195 : vector<128xf32> to vector<1x128xf32>
    %197 = vector.extract_strided_slice %0 {offsets = [0, 16], sizes = [8, 1], strides = [1, 1]} : vector<8x32xf32> to vector<8x1xf32>
    %cst_51 = arith.constant 1.000000e+00 : f32
    %198 = vector.broadcast %cst_51 : f32 to vector<1x128xf32>
    %199 = arith.subf %198, %196 : vector<1x128xf32>
    %200 = vector.broadcast %197 : vector<8x1xf32> to vector<8x128xf32>
    %201 = vector.broadcast %199 : vector<1x128xf32> to vector<8x128xf32>
    %202 = arith.mulf %200, %201 : vector<8x128xf32>
    %cst_52 = arith.constant 1.000000e+00 : f32
    %203 = vector.broadcast %cst_52 : f32 to vector<8x128xf32>
    %204 = arith.subf %203, %202 : vector<8x128xf32>
    %205 = arith.mulf %193, %204 : vector<8x128xf32>
    %c17 = arith.constant 17 : index
    %c0_53 = arith.constant 0 : index
    %206 = vector.load %arg1[%c17, %c0_53] : memref<32x128xf32, #tpu.memory_space<vmem>>, vector<1x128xf32>
    %207 = vector.shape_cast %206 : vector<1x128xf32> to vector<128xf32>
    %208 = vector.shape_cast %207 : vector<128xf32> to vector<1x128xf32>
    %209 = vector.extract_strided_slice %0 {offsets = [0, 17], sizes = [8, 1], strides = [1, 1]} : vector<8x32xf32> to vector<8x1xf32>
    %cst_54 = arith.constant 1.000000e+00 : f32
    %210 = vector.broadcast %cst_54 : f32 to vector<1x128xf32>
    %211 = arith.subf %210, %208 : vector<1x128xf32>
    %212 = vector.broadcast %209 : vector<8x1xf32> to vector<8x128xf32>
    %213 = vector.broadcast %211 : vector<1x128xf32> to vector<8x128xf32>
    %214 = arith.mulf %212, %213 : vector<8x128xf32>
    %cst_55 = arith.constant 1.000000e+00 : f32
    %215 = vector.broadcast %cst_55 : f32 to vector<8x128xf32>
    %216 = arith.subf %215, %214 : vector<8x128xf32>
    %217 = arith.mulf %205, %216 : vector<8x128xf32>
    %c18 = arith.constant 18 : index
    %c0_56 = arith.constant 0 : index
    %218 = vector.load %arg1[%c18, %c0_56] : memref<32x128xf32, #tpu.memory_space<vmem>>, vector<1x128xf32>
    %219 = vector.shape_cast %218 : vector<1x128xf32> to vector<128xf32>
    %220 = vector.shape_cast %219 : vector<128xf32> to vector<1x128xf32>
    %221 = vector.extract_strided_slice %0 {offsets = [0, 18], sizes = [8, 1], strides = [1, 1]} : vector<8x32xf32> to vector<8x1xf32>
    %cst_57 = arith.constant 1.000000e+00 : f32
    %222 = vector.broadcast %cst_57 : f32 to vector<1x128xf32>
    %223 = arith.subf %222, %220 : vector<1x128xf32>
    %224 = vector.broadcast %221 : vector<8x1xf32> to vector<8x128xf32>
    %225 = vector.broadcast %223 : vector<1x128xf32> to vector<8x128xf32>
    %226 = arith.mulf %224, %225 : vector<8x128xf32>
    %cst_58 = arith.constant 1.000000e+00 : f32
    %227 = vector.broadcast %cst_58 : f32 to vector<8x128xf32>
    %228 = arith.subf %227, %226 : vector<8x128xf32>
    %229 = arith.mulf %217, %228 : vector<8x128xf32>
    %c19 = arith.constant 19 : index
    %c0_59 = arith.constant 0 : index
    %230 = vector.load %arg1[%c19, %c0_59] : memref<32x128xf32, #tpu.memory_space<vmem>>, vector<1x128xf32>
    %231 = vector.shape_cast %230 : vector<1x128xf32> to vector<128xf32>
    %232 = vector.shape_cast %231 : vector<128xf32> to vector<1x128xf32>
    %233 = vector.extract_strided_slice %0 {offsets = [0, 19], sizes = [8, 1], strides = [1, 1]} : vector<8x32xf32> to vector<8x1xf32>
    %cst_60 = arith.constant 1.000000e+00 : f32
    %234 = vector.broadcast %cst_60 : f32 to vector<1x128xf32>
    %235 = arith.subf %234, %232 : vector<1x128xf32>
    %236 = vector.broadcast %233 : vector<8x1xf32> to vector<8x128xf32>
    %237 = vector.broadcast %235 : vector<1x128xf32> to vector<8x128xf32>
    %238 = arith.mulf %236, %237 : vector<8x128xf32>
    %cst_61 = arith.constant 1.000000e+00 : f32
    %239 = vector.broadcast %cst_61 : f32 to vector<8x128xf32>
    %240 = arith.subf %239, %238 : vector<8x128xf32>
    %241 = arith.mulf %229, %240 : vector<8x128xf32>
    %c20 = arith.constant 20 : index
    %c0_62 = arith.constant 0 : index
    %242 = vector.load %arg1[%c20, %c0_62] : memref<32x128xf32, #tpu.memory_space<vmem>>, vector<1x128xf32>
    %243 = vector.shape_cast %242 : vector<1x128xf32> to vector<128xf32>
    %244 = vector.shape_cast %243 : vector<128xf32> to vector<1x128xf32>
    %245 = vector.extract_strided_slice %0 {offsets = [0, 20], sizes = [8, 1], strides = [1, 1]} : vector<8x32xf32> to vector<8x1xf32>
    %cst_63 = arith.constant 1.000000e+00 : f32
    %246 = vector.broadcast %cst_63 : f32 to vector<1x128xf32>
    %247 = arith.subf %246, %244 : vector<1x128xf32>
    %248 = vector.broadcast %245 : vector<8x1xf32> to vector<8x128xf32>
    %249 = vector.broadcast %247 : vector<1x128xf32> to vector<8x128xf32>
    %250 = arith.mulf %248, %249 : vector<8x128xf32>
    %cst_64 = arith.constant 1.000000e+00 : f32
    %251 = vector.broadcast %cst_64 : f32 to vector<8x128xf32>
    %252 = arith.subf %251, %250 : vector<8x128xf32>
    %253 = arith.mulf %241, %252 : vector<8x128xf32>
    %c21 = arith.constant 21 : index
    %c0_65 = arith.constant 0 : index
    %254 = vector.load %arg1[%c21, %c0_65] : memref<32x128xf32, #tpu.memory_space<vmem>>, vector<1x128xf32>
    %255 = vector.shape_cast %254 : vector<1x128xf32> to vector<128xf32>
    %256 = vector.shape_cast %255 : vector<128xf32> to vector<1x128xf32>
    %257 = vector.extract_strided_slice %0 {offsets = [0, 21], sizes = [8, 1], strides = [1, 1]} : vector<8x32xf32> to vector<8x1xf32>
    %cst_66 = arith.constant 1.000000e+00 : f32
    %258 = vector.broadcast %cst_66 : f32 to vector<1x128xf32>
    %259 = arith.subf %258, %256 : vector<1x128xf32>
    %260 = vector.broadcast %257 : vector<8x1xf32> to vector<8x128xf32>
    %261 = vector.broadcast %259 : vector<1x128xf32> to vector<8x128xf32>
    %262 = arith.mulf %260, %261 : vector<8x128xf32>
    %cst_67 = arith.constant 1.000000e+00 : f32
    %263 = vector.broadcast %cst_67 : f32 to vector<8x128xf32>
    %264 = arith.subf %263, %262 : vector<8x128xf32>
    %265 = arith.mulf %253, %264 : vector<8x128xf32>
    %c22 = arith.constant 22 : index
    %c0_68 = arith.constant 0 : index
    %266 = vector.load %arg1[%c22, %c0_68] : memref<32x128xf32, #tpu.memory_space<vmem>>, vector<1x128xf32>
    %267 = vector.shape_cast %266 : vector<1x128xf32> to vector<128xf32>
    %268 = vector.shape_cast %267 : vector<128xf32> to vector<1x128xf32>
    %269 = vector.extract_strided_slice %0 {offsets = [0, 22], sizes = [8, 1], strides = [1, 1]} : vector<8x32xf32> to vector<8x1xf32>
    %cst_69 = arith.constant 1.000000e+00 : f32
    %270 = vector.broadcast %cst_69 : f32 to vector<1x128xf32>
    %271 = arith.subf %270, %268 : vector<1x128xf32>
    %272 = vector.broadcast %269 : vector<8x1xf32> to vector<8x128xf32>
    %273 = vector.broadcast %271 : vector<1x128xf32> to vector<8x128xf32>
    %274 = arith.mulf %272, %273 : vector<8x128xf32>
    %cst_70 = arith.constant 1.000000e+00 : f32
    %275 = vector.broadcast %cst_70 : f32 to vector<8x128xf32>
    %276 = arith.subf %275, %274 : vector<8x128xf32>
    %277 = arith.mulf %265, %276 : vector<8x128xf32>
    %c23 = arith.constant 23 : index
    %c0_71 = arith.constant 0 : index
    %278 = vector.load %arg1[%c23, %c0_71] : memref<32x128xf32, #tpu.memory_space<vmem>>, vector<1x128xf32>
    %279 = vector.shape_cast %278 : vector<1x128xf32> to vector<128xf32>
    %280 = vector.shape_cast %279 : vector<128xf32> to vector<1x128xf32>
    %281 = vector.extract_strided_slice %0 {offsets = [0, 23], sizes = [8, 1], strides = [1, 1]} : vector<8x32xf32> to vector<8x1xf32>
    %cst_72 = arith.constant 1.000000e+00 : f32
    %282 = vector.broadcast %cst_72 : f32 to vector<1x128xf32>
    %283 = arith.subf %282, %280 : vector<1x128xf32>
    %284 = vector.broadcast %281 : vector<8x1xf32> to vector<8x128xf32>
    %285 = vector.broadcast %283 : vector<1x128xf32> to vector<8x128xf32>
    %286 = arith.mulf %284, %285 : vector<8x128xf32>
    %cst_73 = arith.constant 1.000000e+00 : f32
    %287 = vector.broadcast %cst_73 : f32 to vector<8x128xf32>
    %288 = arith.subf %287, %286 : vector<8x128xf32>
    %289 = arith.mulf %277, %288 : vector<8x128xf32>
    %c24 = arith.constant 24 : index
    %c0_74 = arith.constant 0 : index
    %290 = vector.load %arg1[%c24, %c0_74] : memref<32x128xf32, #tpu.memory_space<vmem>>, vector<1x128xf32>
    %291 = vector.shape_cast %290 : vector<1x128xf32> to vector<128xf32>
    %292 = vector.shape_cast %291 : vector<128xf32> to vector<1x128xf32>
    %293 = vector.extract_strided_slice %0 {offsets = [0, 24], sizes = [8, 1], strides = [1, 1]} : vector<8x32xf32> to vector<8x1xf32>
    %cst_75 = arith.constant 1.000000e+00 : f32
    %294 = vector.broadcast %cst_75 : f32 to vector<1x128xf32>
    %295 = arith.subf %294, %292 : vector<1x128xf32>
    %296 = vector.broadcast %293 : vector<8x1xf32> to vector<8x128xf32>
    %297 = vector.broadcast %295 : vector<1x128xf32> to vector<8x128xf32>
    %298 = arith.mulf %296, %297 : vector<8x128xf32>
    %cst_76 = arith.constant 1.000000e+00 : f32
    %299 = vector.broadcast %cst_76 : f32 to vector<8x128xf32>
    %300 = arith.subf %299, %298 : vector<8x128xf32>
    %301 = arith.mulf %289, %300 : vector<8x128xf32>
    %c25 = arith.constant 25 : index
    %c0_77 = arith.constant 0 : index
    %302 = vector.load %arg1[%c25, %c0_77] : memref<32x128xf32, #tpu.memory_space<vmem>>, vector<1x128xf32>
    %303 = vector.shape_cast %302 : vector<1x128xf32> to vector<128xf32>
    %304 = vector.shape_cast %303 : vector<128xf32> to vector<1x128xf32>
    %305 = vector.extract_strided_slice %0 {offsets = [0, 25], sizes = [8, 1], strides = [1, 1]} : vector<8x32xf32> to vector<8x1xf32>
    %cst_78 = arith.constant 1.000000e+00 : f32
    %306 = vector.broadcast %cst_78 : f32 to vector<1x128xf32>
    %307 = arith.subf %306, %304 : vector<1x128xf32>
    %308 = vector.broadcast %305 : vector<8x1xf32> to vector<8x128xf32>
    %309 = vector.broadcast %307 : vector<1x128xf32> to vector<8x128xf32>
    %310 = arith.mulf %308, %309 : vector<8x128xf32>
    %cst_79 = arith.constant 1.000000e+00 : f32
    %311 = vector.broadcast %cst_79 : f32 to vector<8x128xf32>
    %312 = arith.subf %311, %310 : vector<8x128xf32>
    %313 = arith.mulf %301, %312 : vector<8x128xf32>
    %c26 = arith.constant 26 : index
    %c0_80 = arith.constant 0 : index
    %314 = vector.load %arg1[%c26, %c0_80] : memref<32x128xf32, #tpu.memory_space<vmem>>, vector<1x128xf32>
    %315 = vector.shape_cast %314 : vector<1x128xf32> to vector<128xf32>
    %316 = vector.shape_cast %315 : vector<128xf32> to vector<1x128xf32>
    %317 = vector.extract_strided_slice %0 {offsets = [0, 26], sizes = [8, 1], strides = [1, 1]} : vector<8x32xf32> to vector<8x1xf32>
    %cst_81 = arith.constant 1.000000e+00 : f32
    %318 = vector.broadcast %cst_81 : f32 to vector<1x128xf32>
    %319 = arith.subf %318, %316 : vector<1x128xf32>
    %320 = vector.broadcast %317 : vector<8x1xf32> to vector<8x128xf32>
    %321 = vector.broadcast %319 : vector<1x128xf32> to vector<8x128xf32>
    %322 = arith.mulf %320, %321 : vector<8x128xf32>
    %cst_82 = arith.constant 1.000000e+00 : f32
    %323 = vector.broadcast %cst_82 : f32 to vector<8x128xf32>
    %324 = arith.subf %323, %322 : vector<8x128xf32>
    %325 = arith.mulf %313, %324 : vector<8x128xf32>
    %c27 = arith.constant 27 : index
    %c0_83 = arith.constant 0 : index
    %326 = vector.load %arg1[%c27, %c0_83] : memref<32x128xf32, #tpu.memory_space<vmem>>, vector<1x128xf32>
    %327 = vector.shape_cast %326 : vector<1x128xf32> to vector<128xf32>
    %328 = vector.shape_cast %327 : vector<128xf32> to vector<1x128xf32>
    %329 = vector.extract_strided_slice %0 {offsets = [0, 27], sizes = [8, 1], strides = [1, 1]} : vector<8x32xf32> to vector<8x1xf32>
    %cst_84 = arith.constant 1.000000e+00 : f32
    %330 = vector.broadcast %cst_84 : f32 to vector<1x128xf32>
    %331 = arith.subf %330, %328 : vector<1x128xf32>
    %332 = vector.broadcast %329 : vector<8x1xf32> to vector<8x128xf32>
    %333 = vector.broadcast %331 : vector<1x128xf32> to vector<8x128xf32>
    %334 = arith.mulf %332, %333 : vector<8x128xf32>
    %cst_85 = arith.constant 1.000000e+00 : f32
    %335 = vector.broadcast %cst_85 : f32 to vector<8x128xf32>
    %336 = arith.subf %335, %334 : vector<8x128xf32>
    %337 = arith.mulf %325, %336 : vector<8x128xf32>
    %c28 = arith.constant 28 : index
    %c0_86 = arith.constant 0 : index
    %338 = vector.load %arg1[%c28, %c0_86] : memref<32x128xf32, #tpu.memory_space<vmem>>, vector<1x128xf32>
    %339 = vector.shape_cast %338 : vector<1x128xf32> to vector<128xf32>
    %340 = vector.shape_cast %339 : vector<128xf32> to vector<1x128xf32>
    %341 = vector.extract_strided_slice %0 {offsets = [0, 28], sizes = [8, 1], strides = [1, 1]} : vector<8x32xf32> to vector<8x1xf32>
    %cst_87 = arith.constant 1.000000e+00 : f32
    %342 = vector.broadcast %cst_87 : f32 to vector<1x128xf32>
    %343 = arith.subf %342, %340 : vector<1x128xf32>
    %344 = vector.broadcast %341 : vector<8x1xf32> to vector<8x128xf32>
    %345 = vector.broadcast %343 : vector<1x128xf32> to vector<8x128xf32>
    %346 = arith.mulf %344, %345 : vector<8x128xf32>
    %cst_88 = arith.constant 1.000000e+00 : f32
    %347 = vector.broadcast %cst_88 : f32 to vector<8x128xf32>
    %348 = arith.subf %347, %346 : vector<8x128xf32>
    %349 = arith.mulf %337, %348 : vector<8x128xf32>
    %c29 = arith.constant 29 : index
    %c0_89 = arith.constant 0 : index
    %350 = vector.load %arg1[%c29, %c0_89] : memref<32x128xf32, #tpu.memory_space<vmem>>, vector<1x128xf32>
    %351 = vector.shape_cast %350 : vector<1x128xf32> to vector<128xf32>
    %352 = vector.shape_cast %351 : vector<128xf32> to vector<1x128xf32>
    %353 = vector.extract_strided_slice %0 {offsets = [0, 29], sizes = [8, 1], strides = [1, 1]} : vector<8x32xf32> to vector<8x1xf32>
    %cst_90 = arith.constant 1.000000e+00 : f32
    %354 = vector.broadcast %cst_90 : f32 to vector<1x128xf32>
    %355 = arith.subf %354, %352 : vector<1x128xf32>
    %356 = vector.broadcast %353 : vector<8x1xf32> to vector<8x128xf32>
    %357 = vector.broadcast %355 : vector<1x128xf32> to vector<8x128xf32>
    %358 = arith.mulf %356, %357 : vector<8x128xf32>
    %cst_91 = arith.constant 1.000000e+00 : f32
    %359 = vector.broadcast %cst_91 : f32 to vector<8x128xf32>
    %360 = arith.subf %359, %358 : vector<8x128xf32>
    %361 = arith.mulf %349, %360 : vector<8x128xf32>
    %c30 = arith.constant 30 : index
    %c0_92 = arith.constant 0 : index
    %362 = vector.load %arg1[%c30, %c0_92] : memref<32x128xf32, #tpu.memory_space<vmem>>, vector<1x128xf32>
    %363 = vector.shape_cast %362 : vector<1x128xf32> to vector<128xf32>
    %364 = vector.shape_cast %363 : vector<128xf32> to vector<1x128xf32>
    %365 = vector.extract_strided_slice %0 {offsets = [0, 30], sizes = [8, 1], strides = [1, 1]} : vector<8x32xf32> to vector<8x1xf32>
    %cst_93 = arith.constant 1.000000e+00 : f32
    %366 = vector.broadcast %cst_93 : f32 to vector<1x128xf32>
    %367 = arith.subf %366, %364 : vector<1x128xf32>
    %368 = vector.broadcast %365 : vector<8x1xf32> to vector<8x128xf32>
    %369 = vector.broadcast %367 : vector<1x128xf32> to vector<8x128xf32>
    %370 = arith.mulf %368, %369 : vector<8x128xf32>
    %cst_94 = arith.constant 1.000000e+00 : f32
    %371 = vector.broadcast %cst_94 : f32 to vector<8x128xf32>
    %372 = arith.subf %371, %370 : vector<8x128xf32>
    %373 = arith.mulf %361, %372 : vector<8x128xf32>
    %c31 = arith.constant 31 : index
    %c0_95 = arith.constant 0 : index
    %374 = vector.load %arg1[%c31, %c0_95] : memref<32x128xf32, #tpu.memory_space<vmem>>, vector<1x128xf32>
    %375 = vector.shape_cast %374 : vector<1x128xf32> to vector<128xf32>
    %376 = vector.shape_cast %375 : vector<128xf32> to vector<1x128xf32>
    %377 = vector.extract_strided_slice %0 {offsets = [0, 31], sizes = [8, 1], strides = [1, 1]} : vector<8x32xf32> to vector<8x1xf32>
    %cst_96 = arith.constant 1.000000e+00 : f32
    %378 = vector.broadcast %cst_96 : f32 to vector<1x128xf32>
    %379 = arith.subf %378, %376 : vector<1x128xf32>
    %380 = vector.broadcast %377 : vector<8x1xf32> to vector<8x128xf32>
    %381 = vector.broadcast %379 : vector<1x128xf32> to vector<8x128xf32>
    %382 = arith.mulf %380, %381 : vector<8x128xf32>
    %cst_97 = arith.constant 1.000000e+00 : f32
    %383 = vector.broadcast %cst_97 : f32 to vector<8x128xf32>
    %384 = arith.subf %383, %382 : vector<8x128xf32>
    %385 = arith.mulf %373, %384 : vector<8x128xf32>
    %c0_98 = arith.constant 0 : index
    %c0_99 = arith.constant 0 : index
    %386 = vector.load %arg3[%c0_98, %c0_99] : memref<8x1xf32, #tpu.memory_space<vmem>>, vector<8x1xf32>
    %387 = vector.broadcast %386 : vector<8x1xf32> to vector<8x128xf32>
    %388 = arith.mulf %387, %385 : vector<8x128xf32>
    %cst_100 = arith.constant dense<0.000000e+00> : vector<128xf32>
    %389 = vector.multi_reduction <add>, %388, %cst_100 [0] : vector<8x128xf32> to vector<128xf32>
    %390 = vector.shape_cast %389 : vector<128xf32> to vector<1x128xf32>
    %c0_101 = arith.constant 0 : index
    %c0_102 = arith.constant 0 : index
    %391 = vector.load %arg4[%c0_101, %c0_102] : memref<1x128xf32, #tpu.memory_space<vmem>>, vector<1x128xf32>
    tpu.vector_store %arg4[%c0_101, %c0_102], %390 {strides = array<i32>} : memref<1x128xf32, #tpu.memory_space<vmem>>, vector<1x128xf32>,
    return
  }
  func.func @transform_0(%arg0: i32) -> (i32, i32) {
    %c0_i32 = arith.constant 0 : i32
    %c0_i32_0 = arith.constant 0 : i32
    return %c0_i32, %arg0 : i32, i32
  }
  func.func @transform_1(%arg0: i32) -> (i32, i32) {
    %c0_i32 = arith.constant 0 : i32
    %c0_i32_0 = arith.constant 0 : i32
    %c0_i32_1 = arith.constant 0 : i32
    return %c0_i32, %c0_i32_0 : i32, i32
  }
  func.func @transform_2(%arg0: i32) -> (i32, i32) {
    %c0_i32 = arith.constant 0 : i32
    %c0_i32_0 = arith.constant 0 : i32
    %c0_i32_1 = arith.constant 0 : i32
    return %c0_i32, %c0_i32_0 : i32, i32
  }
  func.func @transform_3(%arg0: i32) -> (i32, i32) {
    %c0_i32 = arith.constant 0 : i32
    %c0_i32_0 = arith.constant 0 : i32
    return %c0_i32, %arg0 : i32, i32
  }
}

</mosaic_0001>

<bundles_post_ra>
// kernel: tpu_custom_call.1
= control target key start
LH: loop header
LB: loop body
LE: loop exit
PB: predicated region body
PF: predicated region fallthrough
CT: control target
= control target key end

     0   :  { %8 = vsyncpa [#allocation3], 0  ;;  %s748_s0 = inlined_call_operand.hbm [shape: f32[32,128], index: 0, kind: input, shape index: {}]   ;;  %s749_s1 = inlined_call_operand.vmem [shape: f32[8,32], index: 1, kind: input, shape index: {}]   ;;  %s750_s2 = inlined_call_operand.vmem [shape: f32[8,1], index: 2, kind: input, shape index: {}]   ;;  %s751_s3 = inlined_call_operand.hbm [shape: f32[1,128], index: 3, kind: output, shape index: {}]  }
   0x1   :  { %9 = vsyncpa [#allocation4], 0  ;;  %s592_s12 = smov [#allocation2]   ;;  %s544_s16 = scalar_lea.hbm %s748_s0, 512 }
   0x2   :  { %s15_s13 = sshll.u32 %s592_s12, 4  ;;  %p545_p0 = scmp.ne.s32.totalorder %s748_s0, %s544_s16  ;;  %s16_s13 = int_to_ptr.vmem [resolvable:$true] %s15_s13 }
   0x3   :  { %p548_p1 = scmp.lt.u32.totalorder %s544_s16, %s748_s0 }
   0x5   :  { %p550_p2 = pnand %p548_p1, %p545_p0 }
   0x7   :  { %553 = shalt.err (!%p550_p2)
}
   0x8   :  { %s554_s21 = scalar_lea.vmem %s16_s13, 512  ;;  %p559_p4 = scmp.lt.s32.totalorder %s16_s13, %s16_s13 }
   0x9   :  { %p555_p3 = scmp.ne.s32.totalorder %s16_s13, %s554_s21  ;;  %p560_p5 = scmp.lt.s32.totalorder %s554_s21, %s554_s21 }
   0xb   :  { %p561_p6 = por %p560_p5, %p559_p4 }
   0xd   :  { %p562_p7 = pnand %p561_p6, %p555_p3 }
   0xf   :  { %565 = shalt.err (!%p562_p7)
}
  0x10   :  { %s593_s22 = smov 128   ;;  %s594_s23 = smov 8  }
  0x11   :  { %21 = dma.hbm_to_vmem [thread:$0]  %s748_s0, 512, %s16_s13, [#allocation3], %s593_s22, %s593_s22, %s594_s23  }
  0x12   :  { %588 = dma.done.wait [#allocation3], 512  }
  0x13   :  { %589 = vsyncadd [#allocation3], 4294966784  ;;  %v595_v0 = vmov 2   ;;  %v596_v1 = vmov 0   ;;  %v664_v2 = vld [vmem:[%s749_s1] sm:$0xff]  ;;  %v597_v3 = vmov 3   ;;  %v37_v34 = vlaneseq }
  0x14   :  { %513 = vset.pattern.permute.xlu1 %v595_v0  ;;  %511 = vset.pattern.permute.xlu0 %v596_v1  ;;  %v598_v4 = vmov 1   ;;  %v599_v5 = vmov 4   ;;  %v600_v6 = vmov 5   ;;  %v601_v7 = vmov 6   ;;  %v446_v23 = vld [vmem:[%s750_s2] sm:$0xff]  ;;  %s627_s2 = smov [#allocation5]  }
  0x15   :  { %59 = vperm.xlu1 %513, %v664_v2   ;;  %34 = vperm.xlu0 %511, %v664_v2   ;;  %v602_v8 = vmov 8   ;;  %v603_v9 = vmov 7   ;;  %v604_v10 = vmov 11   ;;  %v605_v11 = vmov 9   ;;  %v30_v35 = vld [vmem:[#allocation2] sm:$0x1] }
  0x16   :  { %v606_v12 = vmov 14   ;;  %v607_v13 = vmov 10   ;;  %v608_v14 = vmov 17   ;;  %v609_v15 = vmov 12   ;;  %v56_v38 = vld [vmem:[#allocation2 + $0x2] sm:$0x1] }
  0x17   :  { %v610_v16 = vmov 20   ;;  %v611_v17 = vmov 13   ;;  %v612_v18 = vmov 23   ;;  %v613_v19 = vmov 15   ;;  %v43_v39 = vld [vmem:[#allocation2 + $0x1] sm:$0x1] }
  0x18   :  { %v614_v20 = vmov 26   ;;  %v615_v21 = vmov 16   ;;  %v616_v22 = vmov 29   ;;  %v617_v24 = vmov 18   ;;  %v69_v41 = vld [vmem:[#allocation2 + $0x3] sm:$0x1] }
  0x19   :  { %514 = vset.pattern.permute.xlu1 %v597_v3  ;;  %512 = vset.pattern.permute.xlu0 %v598_v4  ;;  %v618_v25 = vmov 19   ;;  %v619_v26 = vmov 21   ;;  %v620_v27 = vmov 22   ;;  %v621_v28 = vmov 24   ;;  %v82_v48 = vld [vmem:[#allocation2 + $0x4] sm:$0x1] }
  0x1a   :  { %72 = vperm.xlu1 %514, %v664_v2   ;;  %46 = vperm.xlu0 %512, %v664_v2   ;;  %v622_v29 = vmov 25   ;;  %v623_v30 = vmov 27   ;;  %v624_v31 = vmov 28   ;;  %v625_v32 = vmov 30   ;;  %v95_v49 = vld [vmem:[#allocation2 + $0x5] sm:$0x1] }
  0x1b   :  { %v626_v33 = vmov 31   ;;  %v38_v36 = vshrl.u32 %v37_v34, 7  ;;  %v31_v37 = vsub.f32 1.0, %v30_v35  ;;  %v57_v42 = vsub.f32 1.0, %v56_v38  ;;  %v108_v58 = vld [vmem:[#allocation2 + $0x6] sm:$0x1] }
  0x1c   :  { %v44_v44 = vsub.f32 1.0, %v43_v39  ;;  %v70_v47 = vsub.f32 1.0, %v69_v41  ;;  %v83_v53 = vsub.f32 1.0, %v82_v48  ;;  %v96_v54 = vsub.f32 1.0, %v95_v49  ;;  %s466_s28 = sshll.u32 %s627_s2, 4  ;;  %s467_s28 = int_to_ptr.vmem [resolvable:$true] %s466_s28 }
  0x1d   :  { %v702_v40 = vsub.s32 0, %v38_v36  ;;  %s566_s29 = scalar_lea.vmem %s467_s28, 16  ;;  %s570_s30 = scalar_lea.vmem %s467_s28, 32 }
  0x1e   :  { %515 = vset.pattern.permute.xlu1 %v599_v5  ;;  %516 = vset.pattern.permute.xlu0 %v600_v6  ;;  %p567_p8 = scmp.ne.s32.totalorder %s467_s28, %s566_s29  ;;  %p571_p9 = scmp.lt.s32.totalorder %s467_s28, %s467_s28 }
  0x1f   :  { %85 = vperm.xlu1 %515, %v664_v2   ;;  %98 = vperm.xlu0 %516, %v664_v2   ;;  %v40_v43 = vrot.slane %v31_v37, %v702_v40  ;;  %v65_v50 = vrot.slane %v57_v42, %v702_v40  ;;  %v52_v52 = vrot.slane %v44_v44, %v702_v40  ;;  %p572_p10 = scmp.lt.s32.totalorder %s570_s30, %s566_s29 }
  0x20   :  { %v78_v55 = vrot.slane %v70_v47, %v702_v40  ;;  %v91_v62 = vrot.slane %v83_v53, %v702_v40  ;;  %v104_v63 = vrot.slane %v96_v54, %v702_v40  ;;  %v212_v53 = vld [vmem:[#allocation2 + $0xe] sm:$0x1] }
  0x21   :  { %p573_p11 = por %p572_p10, %p571_p9 }
  0x23   :  { %517 = vset.pattern.permute.xlu1 %v601_v7  ;;  %519 = vset.pattern.permute.xlu0 %v602_v8  ;;  %v121_v7 = vld [vmem:[#allocation2 + $0x7] sm:$0x1]  ;;  %v134_v8 = vld [vmem:[#allocation2 + $0x8] sm:$0x1]  ;;  %p574_p12 = pnand %p573_p11, %p567_p8 }
  0x24   :  { %111 = vperm.xlu1 %517, %v664_v2   ;;  %137 = vperm.xlu0 %519, %v664_v2  }
  0x28   :  { %518 = vset.pattern.permute.xlu1 %v603_v9  ;;  %522 = vset.pattern.permute.xlu0 %v604_v10 }
  0x29   :  { %124 = vperm.xlu1 %518, %v664_v2   ;;  %176 = vperm.xlu0 %522, %v664_v2  }
  0x2d   :  { %520 = vset.pattern.permute.xlu1 %v605_v11  ;;  %525 = vset.pattern.permute.xlu0 %v606_v12 }
  0x2e   :  { %150 = vperm.xlu1 %520, %v664_v2   ;;  %215 = vperm.xlu0 %525, %v664_v2  }
  0x32   :  { %521 = vset.pattern.permute.xlu1 %v607_v13  ;;  %528 = vset.pattern.permute.xlu0 %v608_v14 }
  0x33   :  { %163 = vperm.xlu1 %521, %v664_v2   ;;  %254 = vperm.xlu0 %528, %v664_v2  }
  0x37   :  { %523 = vset.pattern.permute.xlu1 %v609_v15  ;;  %531 = vset.pattern.permute.xlu0 %v610_v16  ;;  %v122_v15 = vsub.f32 1.0, %v121_v7  ;;  %v135_v16 = vsub.f32 1.0, %v134_v8 }
  0x38   :  { %189 = vperm.xlu1 %523, %v664_v2   ;;  %293 = vperm.xlu0 %531, %v664_v2  }
  0x3c   :  { %524 = vset.pattern.permute.xlu1 %v611_v17  ;;  %534 = vset.pattern.permute.xlu0 %v612_v18 }
  0x3d   :  { %202 = vperm.xlu1 %524, %v664_v2   ;;  %332 = vperm.xlu0 %534, %v664_v2  }
  0x41   :  { %526 = vset.pattern.permute.xlu1 %v613_v19  ;;  %537 = vset.pattern.permute.xlu0 %v614_v20  ;;  %v147_v20 = vld [vmem:[#allocation2 + $0x9] sm:$0x1] }
  0x42   :  { %228 = vperm.xlu1 %526, %v664_v2   ;;  %371 = vperm.xlu0 %537, %v664_v2  }
  0x46   :  { %527 = vset.pattern.permute.xlu1 %v615_v21  ;;  %540 = vset.pattern.permute.xlu0 %v616_v22 }
  0x47   :  { %241 = vperm.xlu1 %527, %v664_v2   ;;  %410 = vperm.xlu0 %540, %v664_v2  }
  0x4b   :  { %529 = vset.pattern.permute.xlu1 %v617_v24  ;;  %543 = vset.pattern.permute.xlu0 %v596_v1  ;;  %v143_v24 = vrot.slane %v135_v16, %v702_v40 }
  0x4c   :  { %267 = vperm.xlu1 %529, %v664_v2   ;;  %449 = vperm.xlu0 %543, %v446_v23   ;;  %v130_v23 = vrot.slane %v122_v15, %v702_v40 }
  0x50   :  { %530 = vset.pattern.permute.xlu1 %v618_v25 }
  0x51   :  { %280 = vperm.xlu1 %530, %v664_v2  }
  0x55   :  { %532 = vset.pattern.permute.xlu1 %v619_v26  ;;  %v148_v26 = vsub.f32 1.0, %v147_v20 }
  0x56   :  { %306 = vperm.xlu1 %532, %v664_v2  }
  0x57   :  { %v156_v34 = vrot.slane %v148_v26, %v702_v40 }
  0x5a   :  { %533 = vset.pattern.permute.xlu1 %v620_v27 }
  0x5b   :  { %319 = vperm.xlu1 %533, %v664_v2  }
  0x5f   :  { %535 = vset.pattern.permute.xlu1 %v621_v28 }
  0x60   :  { %345 = vperm.xlu1 %535, %v664_v2  }
  0x64   :  { %536 = vset.pattern.permute.xlu1 %v622_v29 }
  0x65   :  { %358 = vperm.xlu1 %536, %v664_v2  }
  0x69   :  { %538 = vset.pattern.permute.xlu1 %v623_v30  ;;  %v160_v30 = vld [vmem:[#allocation2 + $0xa] sm:$0x1] }
  0x6a   :  { %384 = vperm.xlu1 %538, %v664_v2   ;;  %v161_v37 = vsub.f32 1.0, %v160_v30  ;;  %v277_v30 = vld [vmem:[#allocation2 + $0x13] sm:$0x1] }
  0x6e   :  { %539 = vset.pattern.permute.xlu1 %v624_v31  ;;  %v173_v31 = vld [vmem:[#allocation2 + $0xb] sm:$0x1] }
  0x6f   :  { %397 = vperm.xlu1 %539, %v664_v2   ;;  %v174_v38 = vsub.f32 1.0, %v173_v31  ;;  %v290_v31 = vld [vmem:[#allocation2 + $0x14] sm:$0x1] }
  0x73   :  { %541 = vset.pattern.permute.xlu1 %v625_v32 }
  0x74   :  { %423 = vperm.xlu1 %541, %v664_v2  }
  0x78   :  { %542 = vset.pattern.permute.xlu1 %v626_v33 }
  0x79   :  { %436 = vperm.xlu1 %542, %v664_v2   ;;  %v109_v2 = vsub.f32 1.0, %v108_v58 }
  0x7b   :  { %v117_v13 = vrot.slane %v109_v2, %v702_v40 }
  0x94   :  { %v60_v45 = vpop.permute.xlu1 %59  ;;  %v35_v46 = vpop.permute.xlu0 %34 }
  0x95   :  { %v41_v51 = vmul.f32 %v40_v43, %v35_v46  ;;  %v66_v59 = vmul.f32 %v65_v50, %v60_v45  ;;  %v186_v43 = vld [vmem:[#allocation2 + $0xc] sm:$0x1]  ;;  %v169_v45 = vrot.slane %v161_v37, %v702_v40  ;;  %v182_v46 = vrot.slane %v174_v38, %v702_v40 }
  0x96   :  { %v187_v48 = vsub.f32 1.0, %v186_v43  ;;  %v278_v37 = vsub.f32 1.0, %v277_v30  ;;  %v291_v38 = vsub.f32 1.0, %v290_v31  ;;  %v303_v43 = vld [vmem:[#allocation2 + $0x15] sm:$0x1] }
  0x97   :  { %v42_v60 = vsub.f32 1.0, %v41_v51  ;;  %v67_v3 = vsub.f32 1.0, %v66_v59  ;;  %v394_v30 = vld [vmem:[#allocation2 + $0x1c] sm:$0x1]  ;;  %v407_v31 = vld [vmem:[#allocation2 + $0x1d] sm:$0x1] }
  0x99   :  { %v73_v56 = vpop.permute.xlu1 %72  ;;  %v47_v57 = vpop.permute.xlu0 %46 }
  0x9a   :  { %v53_v61 = vmul.f32 %v52_v52, %v47_v57  ;;  %v79_v0 = vmul.f32 %v78_v55, %v73_v56  ;;  %v199_v52 = vld [vmem:[#allocation2 + $0xd] sm:$0x1]  ;;  %v195_v56 = vrot.slane %v187_v48, %v702_v40  ;;  %v304_v48 = vsub.f32 1.0, %v303_v43  ;;  %v420_v43 = vld [vmem:[#allocation2 + $0x1e] sm:$0x1] }
  0x9b   :  { %v200_v59 = vsub.f32 1.0, %v199_v52  ;;  %v316_v52 = vld [vmem:[#allocation2 + $0x16] sm:$0x1] }
  0x9c   :  { %v54_v1 = vsub.f32 1.0, %v53_v61  ;;  %v80_v11 = vsub.f32 1.0, %v79_v0  ;;  %v225_v0 = vld [vmem:[#allocation2 + $0xf] sm:$0x1] }
  0x9d   :  { %v208_v2 = vrot.slane %v200_v59, %v702_v40  ;;  %v317_v59 = vsub.f32 1.0, %v316_v52  ;;  %v433_v52 = vld [vmem:[#allocation2 + $0x1f] sm:$0x1] }
  0x9e   :  { %v55_v4 = vmul.f32 %v54_v1, %v42_v60  ;;  %v86_v5 = vpop.permute.xlu1 %85  ;;  %v99_v6 = vpop.permute.xlu0 %98  ;;  %v213_v60 = vsub.f32 1.0, %v212_v53  ;;  %v329_v53 = vld [vmem:[#allocation2 + $0x17] sm:$0x1] }
  0x9f   :  { %v92_v9 = vmul.f32 %v91_v62, %v86_v5  ;;  %v105_v10 = vmul.f32 %v104_v63, %v99_v6  ;;  %v226_v5 = vsub.f32 1.0, %v225_v0  ;;  %v342_v0 = vld [vmem:[#allocation2 + $0x18] sm:$0x1] }
  0xa0   :  { %v68_v12 = vmul.f32 %v67_v3, %v55_v4  ;;  %v221_v3 = vrot.slane %v213_v60, %v702_v40  ;;  %v330_v60 = vsub.f32 1.0, %v329_v53 }
  0xa1   :  { %v93_v14 = vsub.f32 1.0, %v92_v9  ;;  %v106_v18 = vsub.f32 1.0, %v105_v10  ;;  %v238_v9 = vld [vmem:[#allocation2 + $0x10] sm:$0x1]  ;;  %v251_v10 = vld [vmem:[#allocation2 + $0x11] sm:$0x1] }
  0xa2   :  { %v81_v17 = vmul.f32 %v80_v11, %v68_v12  ;;  %v239_v16 = vsub.f32 1.0, %v238_v9  ;;  %v355_v9 = vld [vmem:[#allocation2 + $0x19] sm:$0x1] }
  0xa3   :  { %v112_v19 = vpop.permute.xlu1 %111  ;;  %v138_v25 = vpop.permute.xlu0 %137 }
  0xa4   :  { %v94_v21 = vmul.f32 %v93_v14, %v81_v17  ;;  %v118_v22 = vmul.f32 %v117_v13, %v112_v19  ;;  %v144_v33 = vmul.f32 %v143_v24, %v138_v25  ;;  %v234_v13 = vrot.slane %v226_v5, %v702_v40 }
  0xa5   :  { %v252_v17 = vsub.f32 1.0, %v251_v10  ;;  %v343_v5 = vsub.f32 1.0, %v342_v0  ;;  %v368_v10 = vld [vmem:[#allocation2 + $0x1a] sm:$0x1] }
  0xa6   :  { %v107_v27 = vmul.f32 %v106_v18, %v94_v21  ;;  %v119_v28 = vsub.f32 1.0, %v118_v22  ;;  %v145_v41 = vsub.f32 1.0, %v144_v33  ;;  %v264_v21 = vld [vmem:[#allocation2 + $0x12] sm:$0x1] }
  0xa7   :  { %v260_v24 = vrot.slane %v252_v17, %v702_v40  ;;  %v265_v26 = vsub.f32 1.0, %v264_v21  ;;  %v369_v17 = vsub.f32 1.0, %v368_v10  ;;  %v381_v21 = vld [vmem:[#allocation2 + $0x1b] sm:$0x1] }
  0xa8   :  { %v125_v29 = vpop.permute.xlu1 %124  ;;  %v120_v35 = vmul.f32 %v119_v28, %v107_v27  ;;  %v177_v47 = vpop.permute.xlu0 %176 }
  0xa9   :  { %v131_v32 = vmul.f32 %v130_v23, %v125_v29  ;;  %v183_v55 = vmul.f32 %v182_v46, %v177_v47  ;;  %v247_v23 = vrot.slane %v239_v16, %v702_v40  ;;  %v299_v46 = vrot.slane %v291_v38, %v702_v40 }
  0xaa   :  { %v356_v16 = vsub.f32 1.0, %v355_v9  ;;  %v408_v38 = vsub.f32 1.0, %v407_v31 }
  0xab   :  { %v132_v36 = vsub.f32 1.0, %v131_v32  ;;  %v184_v62 = vsub.f32 1.0, %v183_v55 }
  0xad   :  { %v133_v39 = vmul.f32 %v132_v36, %v120_v35  ;;  %v151_v42 = vpop.permute.xlu1 %150  ;;  %v216_v4 = vpop.permute.xlu0 %215 }
  0xae   :  { %v157_v44 = vmul.f32 %v156_v34, %v151_v42  ;;  %v222_v12 = vmul.f32 %v221_v3, %v216_v4  ;;  %v273_v34 = vrot.slane %v265_v26, %v702_v40  ;;  %v338_v3 = vrot.slane %v330_v60, %v702_v40 }
  0xaf   :  { %v146_v49 = vmul.f32 %v145_v41, %v133_v39  ;;  %v382_v26 = vsub.f32 1.0, %v381_v21 }
  0xb0   :  { %v158_v50 = vsub.f32 1.0, %v157_v44  ;;  %v223_v19 = vsub.f32 1.0, %v222_v12 }
  0xb2   :  { %v164_v51 = vpop.permute.xlu1 %163  ;;  %v159_v57 = vmul.f32 %v158_v50, %v146_v49  ;;  %v255_v25 = vpop.permute.xlu0 %254 }
  0xb3   :  { %v170_v54 = vmul.f32 %v169_v45, %v164_v51  ;;  %v261_v33 = vmul.f32 %v260_v24, %v255_v25  ;;  %v286_v45 = vrot.slane %v278_v37, %v702_v40  ;;  %v377_v24 = vrot.slane %v369_v17, %v702_v40 }
  0xb4   :  { %v395_v37 = vsub.f32 1.0, %v394_v30 }
  0xb5   :  { %v171_v58 = vsub.f32 1.0, %v170_v54  ;;  %v262_v41 = vsub.f32 1.0, %v261_v33 }
  0xb7   :  { %v172_v61 = vmul.f32 %v171_v58, %v159_v57  ;;  %v190_v63 = vpop.permute.xlu1 %189  ;;  %v294_v47 = vpop.permute.xlu0 %293 }
  0xb8   :  { %v196_v1 = vmul.f32 %v195_v56, %v190_v63  ;;  %v300_v55 = vmul.f32 %v299_v46, %v294_v47  ;;  %v312_v56 = vrot.slane %v304_v48, %v702_v40  ;;  %v416_v46 = vrot.slane %v408_v38, %v702_v40 }
  0xb9   :  { %v185_v6 = vmul.f32 %v184_v62, %v172_v61  ;;  %v421_v48 = vsub.f32 1.0, %v420_v43 }
  0xba   :  { %v197_v7 = vsub.f32 1.0, %v196_v1  ;;  %v301_v62 = vsub.f32 1.0, %v300_v55 }
  0xbb   :  { %v429_v55 = vrot.slane %v421_v48, %v702_v40 }
  0xbc   :  { %v203_v8 = vpop.permute.xlu1 %202  ;;  %v198_v14 = vmul.f32 %v197_v7, %v185_v6  ;;  %v333_v4 = vpop.permute.xlu0 %332 }
  0xbd   :  { %v209_v11 = vmul.f32 %v208_v2, %v203_v8  ;;  %v325_v2 = vrot.slane %v317_v59, %v702_v40  ;;  %v339_v12 = vmul.f32 %v338_v3, %v333_v4 }
  0xbf   :  { %v210_v15 = vsub.f32 1.0, %v209_v11 }
  0xc1   :  { %v211_v18 = vmul.f32 %v210_v15, %v198_v14  ;;  %v229_v20 = vpop.permute.xlu1 %228  ;;  %v372_v25 = vpop.permute.xlu0 %371 }
  0xc2   :  { %v235_v22 = vmul.f32 %v234_v13, %v229_v20  ;;  %v351_v13 = vrot.slane %v343_v5, %v702_v40  ;;  %v378_v33 = vmul.f32 %v377_v24, %v372_v25 }
  0xc3   :  { %v224_v27 = vmul.f32 %v223_v19, %v211_v18  ;;  %v340_v19 = vsub.f32 1.0, %v339_v12 }
  0xc4   :  { %v236_v28 = vsub.f32 1.0, %v235_v22 }
  0xc6   :  { %v242_v29 = vpop.permute.xlu1 %241  ;;  %v237_v35 = vmul.f32 %v236_v28, %v224_v27  ;;  %v411_v47 = vpop.permute.xlu0 %410 }
  0xc7   :  { %v248_v32 = vmul.f32 %v247_v23, %v242_v29  ;;  %v364_v23 = vrot.slane %v356_v16, %v702_v40 }
  0xc9   :  { %v249_v36 = vsub.f32 1.0, %v248_v32 }
  0xcb   :  { %v250_v39 = vmul.f32 %v249_v36, %v237_v35  ;;  %v268_v42 = vpop.permute.xlu1 %267 }
  0xcc   :  { %v274_v44 = vmul.f32 %v273_v34, %v268_v42  ;;  %v390_v34 = vrot.slane %v382_v26, %v702_v40 }
  0xcd   :  { %v263_v49 = vmul.f32 %v262_v41, %v250_v39  ;;  %v379_v41 = vsub.f32 1.0, %v378_v33 }
  0xce   :  { %v275_v50 = vsub.f32 1.0, %v274_v44 }
  0xd0   :  { %v281_v51 = vpop.permute.xlu1 %280  ;;  %v276_v57 = vmul.f32 %v275_v50, %v263_v49 }
  0xd1   :  { %v287_v54 = vmul.f32 %v286_v45, %v281_v51  ;;  %v403_v45 = vrot.slane %v395_v37, %v702_v40 }
  0xd3   :  { %v288_v58 = vsub.f32 1.0, %v287_v54  ;;  %v417_v54 = vmul.f32 %v416_v46, %v411_v47 }
  0xd5   :  { %v289_v61 = vmul.f32 %v288_v58, %v276_v57  ;;  %v307_v63 = vpop.permute.xlu1 %306  ;;  %v434_v58 = vsub.f32 1.0, %v433_v52  ;;  %v418_v60 = vsub.f32 1.0, %v417_v54 }
  0xd6   :  { %v313_v1 = vmul.f32 %v312_v56, %v307_v63 }
  0xd7   :  { %v302_v6 = vmul.f32 %v301_v62, %v289_v61  ;;  %v442_v63 = vrot.slane %v434_v58, %v702_v40 }
  0xd8   :  { %v314_v7 = vsub.f32 1.0, %v313_v1 }
  0xda   :  { %v320_v8 = vpop.permute.xlu1 %319  ;;  %v315_v14 = vmul.f32 %v314_v7, %v302_v6  ;;  %v450_v6 = vpop.permute.xlu0 %449 }
  0xdb   :  { %v326_v11 = vmul.f32 %v325_v2, %v320_v8 }
  0xdd   :  { %v327_v15 = vsub.f32 1.0, %v326_v11 }
  0xdf   :  { %v328_v18 = vmul.f32 %v327_v15, %v315_v14  ;;  %v346_v20 = vpop.permute.xlu1 %345 }
  0xe0   :  { %v352_v22 = vmul.f32 %v351_v13, %v346_v20 }
  0xe1   :  { %v341_v27 = vmul.f32 %v340_v19, %v328_v18 }
  0xe2   :  { %v353_v28 = vsub.f32 1.0, %v352_v22 }
  0xe4   :  { %v359_v29 = vpop.permute.xlu1 %358  ;;  %v354_v35 = vmul.f32 %v353_v28, %v341_v27 }
  0xe5   :  { %v365_v32 = vmul.f32 %v364_v23, %v359_v29 }
  0xe7   :  { %v366_v36 = vsub.f32 1.0, %v365_v32 }
  0xe9   :  { %v367_v39 = vmul.f32 %v366_v36, %v354_v35  ;;  %v385_v42 = vpop.permute.xlu1 %384 }
  0xea   :  { %v391_v44 = vmul.f32 %v390_v34, %v385_v42 }
  0xeb   :  { %v380_v49 = vmul.f32 %v379_v41, %v367_v39 }
  0xec   :  { %v392_v50 = vsub.f32 1.0, %v391_v44 }
  0xee   :  { %v398_v51 = vpop.permute.xlu1 %397  ;;  %v393_v56 = vmul.f32 %v392_v50, %v380_v49 }
  0xef   :  { %v404_v53 = vmul.f32 %v403_v45, %v398_v51 }
  0xf1   :  { %v405_v57 = vsub.f32 1.0, %v404_v53 }
  0xf3   :  { %v406_v59 = vmul.f32 %v405_v57, %v393_v56  ;;  %v424_v61 = vpop.permute.xlu1 %423 }
  0xf4   :  { %v430_v62 = vmul.f32 %v429_v55, %v424_v61 }
  0xf5   :  { %v419_v0 = vmul.f32 %v418_v60, %v406_v59 }
  0xf6   :  { %v431_v1 = vsub.f32 1.0, %v430_v62 }
  0xf8   :  { %v437_v2 = vpop.permute.xlu1 %436  ;;  %v432_v4 = vmul.f32 %v431_v1, %v419_v0 }
  0xf9   :  { %v443_v3 = vmul.f32 %v442_v63, %v437_v2 }
  0xfb   :  { %v444_v5 = vsub.f32 1.0, %v443_v3 }
  0xfd   :  { %v445_v7 = vmul.f32 %v444_v5, %v432_v4 }
  0xff   :  { %v452_v8 = vmul.f32 %v450_v6, %v445_v7 }
 0x101   :  { %v453_v9 = vrot.slane %v452_v8, 4 }
 0x103   :  { %v454_v10 = vadd.f32 %v453_v9, %v452_v8 }
 0x105   :  { %v455_v11 = vrot.slane %v454_v10, 2 }
 0x107   :  { %v456_v12 = vadd.f32 %v455_v11, %v454_v10 }
 0x109   :  { %v457_v13 = vrot.slane %v456_v12, 1 }
 0x10b   :  { %v458_v14 = vadd.f32 %v457_v13, %v456_v12 }
 0x10d   :  { %459 = vst [vmem:[#allocation5] sm:$0x1] %v458_v14 }
 0x10e   :  { %577 = shalt.err (!%p574_p12)
}
 0x10f   :  { %s578_s6 = scalar_lea.hbm %s751_s3, 16 }
 0x110   :  { %p579_p13 = scmp.ne.s32.totalorder %s751_s3, %s578_s6  ;;  %p582_p0 = scmp.lt.u32.totalorder %s578_s6, %s751_s3 }
 0x112   :  { %p584_p1 = pnand %p582_p0, %p579_p13 }
 0x114   :  { %587 = shalt.err (!%p584_p1)
}
 0x115   :  { %469 = dma.vmem_to_hbm [thread:$0]  %s467_s28, 16, %s751_s3, [#allocation4]  }
 0x116   :  { %590 = dma.done.wait [#allocation4], 16  }
 0x117   :  { %591 = vsyncadd [#allocation4], 4294967280 }
 0x118   :  { %473 = vsyncpa [#allocation3], 1 }
 0x119   :  { %474 = vsyncpa [#allocation4], 1 }

</bundles_post_ra>
